<compile_context>
chip_gen: v7x
topology: tpu7x:2x2x1
jax: 0.10.0
libtpu: 0.0.40
codegen_flags: <defaults>
</compile_context>

<pallas_src>
import functools

import jax
import jax.numpy as jnp
from jax.experimental import pallas as pl
from jax.experimental.pallas import tpu as pltpu

_LANE = 128
_BLOCK_B_CHOICES = (8, 16, 32, 64, 128, 256, 512, 1024, 2048)


# ------------------------------ small helpers -------------------------------

def _round_up(n, m):
    return ((n + m - 1) // m) * m


def _pad_axis(a, axis, size):
    pad = size - a.shape[axis]
    if pad <= 0:
        return a
    widths = [(0, 0)] * a.ndim
    widths[axis] = (0, pad)
    return jnp.pad(a, widths)


def _itemsize(dt):
    return jnp.dtype(dt).itemsize


def _vmem_capacity_bytes():
    """Physical VMEM per TensorCore; conservative 64 MiB if unknown."""
    try:
        return int(pltpu.get_tpu_info().vmem_capacity_bytes)
    except Exception:
        return 64 << 20


def _budget():
    cap = _vmem_capacity_bytes()
    soft = (cap * 3) // 4                       # ~48 MiB v7x, ~96 MiB v5e/v6e
    limit = max(16 << 20, min(soft + (8 << 20), cap - (8 << 20)))
    max_block_b = 2048 if cap >= (96 << 20) else 1024
    return soft, limit, max_block_b


_BUFFERED_1_OK = None


def _probe_kernel(x_ref, o_ref):
    o_ref[...] = x_ref[...] + 1.0


def _single_buffer_supported():
    """Probe once (eagerly) whether pipeline_mode=pl.Buffered(1) lowers here."""
    global _BUFFERED_1_OK
    if _BUFFERED_1_OK is None:
        try:
            spec = pl.BlockSpec((8, 128), lambda i: (0, 0),
                                pipeline_mode=pl.Buffered(1))
            probe = pl.pallas_call(
                _probe_kernel,
                out_shape=jax.ShapeDtypeStruct((8, 128), jnp.float32),
                grid_spec=pl.GridSpec(
                    grid=(1,),
                    in_specs=[spec],
                    out_specs=pl.BlockSpec((8, 128), lambda i: (0, 0))),
            )
            jax.block_until_ready(probe(jnp.zeros((8, 128), jnp.float32)))
            _BUFFERED_1_OK = True
        except Exception:
            _BUFFERED_1_OK = False
    return _BUFFERED_1_OK


def _weight_spec(shape, index_map, single_buffer):
    """Spec for a grid-invariant operand: fetched once, one VMEM buffer."""
    if single_buffer:
        return pl.BlockSpec(shape, index_map, pipeline_mode=pl.Buffered(1))
    return pl.BlockSpec(shape, index_map)


# --------------------------------- planning ---------------------------------

def _pick_block_b(batch, per_row_bytes, resident_bytes, soft_cap, max_block_b):
    """Smallest power-of-two batch tile covering `batch`, capped by VMEM."""
    target = next((c for c in _BLOCK_B_CHOICES if c >= batch),
                  _BLOCK_B_CHOICES[-1])
    tb = min(target, max_block_b)
    while tb > 8 and resident_bytes + 2 * tb * per_row_bytes > soft_cap:
        tb //= 2
    return max(tb, 8)


def _plan_linear(batch, K, F_pad, x_dt, w_dt, out_dt, soft, max_block_b, sb):
    """Pick (block_b, block_n) for a single Linear pass."""
    x_isz, w_isz, o_isz = _itemsize(x_dt), _itemsize(w_dt), _itemsize(out_dt)
    rf = 1 if sb else 2                       # resident buffering factor

    def tile_bytes(tb, tn):                   # streamed x + out tiles (2x buf)
        return 2 * tb * (K * x_isz + tn * o_isz)

    full_w = K * F_pad * w_isz + F_pad * 4
    if rf * full_w + tile_bytes(64, F_pad) <= soft:
        # Weights fully resident; batch tile as large as the budget allows.
        block_b = _pick_block_b(batch, K * x_isz + F_pad * o_isz,
                                rf * full_w, soft, max_block_b)
        b_steps = -(-batch // block_b)
        if b_steps == 1 and F_pad % (2 * _LANE) == 0:
            # Split columns so a 1-step batch grid still feeds both
            # TensorCores on multi-core chips (v7x); harmless elsewhere.
            return block_b, F_pad // 2
        return block_b, F_pad
    # Weights too large to keep fully resident: stream double-buffered column
    # tiles of the weight instead of shrinking block_b toward degenerate tiles.
    m = F_pad // _LANE
    for nsplit in range(2, m + 1):
        tn = _LANE * (-(-m // nsplit))
        w_blk = 2 * (K * tn * w_isz + tn * 4)
        if w_blk + tile_bytes(64, tn) <= soft:
            block_b = _pick_block_b(batch, K * x_isz + tn * o_isz,
                                    w_blk, soft, max_block_b)
            return block_b, tn
    return 8, _LANE


def _plan_mlp(batch, K, F_pad, H_pad, x_dt, w_dt, out_dt, soft, max_block_b, sb):
    """Pick block_b for the fused Linear->Linear kernel, or None to unfuse."""
    x_isz, w_isz, o_isz = _itemsize(x_dt), _itemsize(w_dt), _itemsize(out_dt)
    rf = 1 if sb else 2
    resident = rf * ((K * F_pad + F_pad * H_pad) * w_isz + (F_pad + H_pad) * 4)
    per_row = K * x_isz + F_pad * 4 + H_pad * o_isz   # x tile + f32 h + out
    if resident + 2 * 64 * per_row > soft:
        return None
    return _pick_block_b(batch, per_row, resident, soft, max_block_b)


# ----------------------------- Pallas kernels -------------------------------

def _linear_kernel(x_ref, w_ref, b_ref, o_ref):
    """o = x @ w + b (bias is f32; x is cast to the weight dtype on the VPU)."""
    x = x_ref[...].astype(w_ref.dtype)
    acc = jnp.dot(x, w_ref[...], preferred_element_type=jnp.float32)
    o_ref[...] = (acc + b_ref[...]).astype(o_ref.dtype)


def _mlp_kernel(x_ref, w1_ref, b1_ref, w2_ref, b2_ref, o_ref):
    """o = (x @ w1 + b1) @ w2 + b2 (fused Linear followed by the head)."""
    x = x_ref[...].astype(w1_ref.dtype)
    h = jnp.dot(x, w1_ref[...], preferred_element_type=jnp.float32)
    h = h + b1_ref[...]
    # Keep the f32 accumulator flowing into the second matmul; only downcast
    # when the weights are deliberately stored narrow (bf16 MXU fast path).
    if w2_ref.dtype != jnp.float32:
        h = h.astype(w2_ref.dtype)
    acc = jnp.dot(h, w2_ref[...], preferred_element_type=jnp.float32)
    o_ref[...] = (acc + b2_ref[...]).astype(o_ref.dtype)


# -------------------------------- wrappers -----------------------------------

@functools.partial(
    jax.jit,
    static_argnames=("block_b", "block_n", "out_dim", "vmem_limit", "sb"))
def _linear_forward(x, w, b, *, block_b, block_n, out_dim, vmem_limit, sb):
    B, K = x.shape
    F = w.shape[1]
    b_steps = pl.cdiv(B, block_b)
    n_steps = pl.cdiv(F, block_n)
    resident = (n_steps == 1) and sb          # constant across the whole grid

    in_specs = [
        pl.BlockSpec((block_b, K), lambda i, j: (i, 0)),          # streamed x
        _weight_spec((K, block_n), lambda i, j: (0, j), resident),  # weight cols
        _weight_spec((1, block_n), lambda i, j: (0, j), resident),  # f32 bias
    ]
    flops = 2 * B * K * F
    bytes_accessed = int(B * K * x.dtype.itemsize
                         + w.size * w.dtype.itemsize
                         + b.size * b.dtype.itemsize
                         + B * F * x.dtype.itemsize)
    out = pl.pallas_call(
        _linear_kernel,
        out_shape=jax.ShapeDtypeStruct((B, F), x.dtype),
        grid_spec=pl.GridSpec(
            grid=(b_steps, n_steps),
            in_specs=in_specs,
            out_specs=pl.BlockSpec((block_b, block_n), lambda i, j: (i, j)),
        ),
        compiler_params=pltpu.CompilerParams(
            dimension_semantics=("parallel", "parallel"),
            vmem_limit_bytes=vmem_limit,
        ),
        cost_estimate=pl.CostEstimate(flops=flops, transcendentals=0,
                                      bytes_accessed=bytes_accessed),
    )(x, w, b)
    return out if out_dim == F else out[:, :out_dim]


@functools.partial(
    jax.jit, static_argnames=("block_b", "out_dim", "vmem_limit", "sb"))
def _mlp_forward(x, w1, b1, w2, b2, *, block_b, out_dim, vmem_limit, sb):
    B, K = x.shape
    F = w1.shape[1]
    H = w2.shape[1]
    b_steps = pl.cdiv(B, block_b)

    flops = 2 * B * (K * F + F * H)
    bytes_accessed = int(B * K * x.dtype.itemsize
                         + w1.size * w1.dtype.itemsize
                         + b1.size * b1.dtype.itemsize
                         + w2.size * w2.dtype.itemsize
                         + b2.size * b2.dtype.itemsize
                         + B * H * x.dtype.itemsize)
    out = pl.pallas_call(
        _mlp_kernel,
        out_shape=jax.ShapeDtypeStruct((B, H), x.dtype),
        grid_spec=pl.GridSpec(
            grid=(b_steps,),
            in_specs=[
                pl.BlockSpec((block_b, K), lambda i: (i, 0)),       # streamed x
                _weight_spec((K, F), lambda i: (0, 0), sb),         # resident w1
                _weight_spec((1, F), lambda i: (0, 0), sb),         # resident b1
                _weight_spec((F, H), lambda i: (0, 0), sb),         # resident w2
                _weight_spec((1, H), lambda i: (0, 0), sb),         # resident b2
            ],
            out_specs=pl.BlockSpec((block_b, H), lambda i: (i, 0)),
        ),
        compiler_params=pltpu.CompilerParams(
            dimension_semantics=("parallel",),
            vmem_limit_bytes=vmem_limit,
        ),
        cost_estimate=pl.CostEstimate(flops=flops, transcendentals=0,
                                      bytes_accessed=bytes_accessed),
    )(x, w1, b1, w2, b2)
    return out if out_dim == H else out[:, :out_dim]


# ---------------------------------- module -----------------------------------

class NeuralNetPallas:
    """JAX/Pallas port of NeuralNet's forward pass.

    model = Linear(in_size, ftdim); `fc` (the head) is modelled as an optional
    Linear(ftdim, head_dim). Weights use nn.Linear's default
    U(-1/sqrt(fan_in), 1/sqrt(fan_in)) init. compute_dtype=jnp.bfloat16 is the
    fast path (bf16 MXU + halved weight/x DMA, f32 accumulation, f32 bias);
    the default keeps f32 to match the PyTorch module's numerics.
    """

    def __init__(self, in_size, ftdim, head_dim=None, key=None,
                 dtype=jnp.float32, compute_dtype=None):
        if key is None:
            key = jax.random.PRNGKey(0)
        compute_dtype = compute_dtype or dtype
        self.in_size, self.ftdim, self.head_dim = in_size, ftdim, head_dim
        self.dtype = dtype
        self.compute_dtype = compute_dtype

        k1, k2, k3, k4 = jax.random.split(key, 4)
        bound1 = 1.0 / (in_size ** 0.5)
        # stored as (in, out): the kernel does x @ W (== torch's x @ W.T)
        self.w1 = jax.random.uniform(k1, (in_size, ftdim), dtype, -bound1, bound1)
        self.b1 = jax.random.uniform(k2, (1, ftdim), dtype, -bound1, bound1)
        if head_dim is not None:
            bound2 = 1.0 / (ftdim ** 0.5)
            self.w2 = jax.random.uniform(k3, (ftdim, head_dim), dtype, -bound2, bound2)
            self.b2 = jax.random.uniform(k4, (1, head_dim), dtype, -bound2, bound2)
        else:
            self.w2, self.b2 = None, None

        # Lane-dense padded compute copies. Zero-padded columns/rows contribute
        # nothing; the wrappers slice the padding away at the API boundary.
        # TODO(synk): on v6e/v7x, dims in (128, 256) could be padded to 256 to
        # match the 256-wide MXU tile (kept at 128 for v5e friendliness).
        ftdim_p = _round_up(ftdim, _LANE)
        self._w1p = _pad_axis(self.w1.astype(compute_dtype), 1, ftdim_p)
        self._b1p = _pad_axis(self.b1.astype(jnp.float32), 1, ftdim_p)
        if head_dim is not None:
            head_p = _round_up(head_dim, _LANE)
            self._w2p = _pad_axis(
                _pad_axis(self.w2.astype(compute_dtype), 0, ftdim_p), 1, head_p)
            self._b2p = _pad_axis(self.b2.astype(jnp.float32), 1, head_p)
        else:
            self._w2p, self._b2p = None, None

        self._soft_cap, self._vmem_limit, self._max_block_b = _budget()
        self._sb = _single_buffer_supported()   # eager probe (outside jit)

    # --- single Linear pass (model(x); also the unfused fallback building block)
    def _linear(self, x, w, b, out_dim):
        block_b, block_n = _plan_linear(
            x.shape[0], x.shape[1], w.shape[1], x.dtype, w.dtype, x.dtype,
            self._soft_cap, self._max_block_b, self._sb)
        return _linear_forward(x, w, b, block_b=block_b, block_n=block_n,
                               out_dim=out_dim, vmem_limit=self._vmem_limit,
                               sb=self._sb)

    def forward(self, x):
        if self._w2p is None:                          # fc == None branch
            return self.forward_feat(x)
        K = x.shape[1]
        F, H = self._w1p.shape[1], self._w2p.shape[1]
        block_b = _plan_mlp(x.shape[0], K, F, H, x.dtype, self._w1p.dtype,
                            x.dtype, self._soft_cap, self._max_block_b, self._sb)
        if block_b is not None:                        # fused Linear -> head
            return _mlp_forward(x, self._w1p, self._b1p, self._w2p, self._b2p,
                                block_b=block_b, out_dim=self.head_dim,
                                vmem_limit=self._vmem_limit, sb=self._sb)
        # Residents too large to fuse on this chip: two lane-dense passes. The
        # hidden stays lane padded (padded columns of h and padded rows of w2
        # are exactly zero, so the result is unchanged and no slice is needed).
        h = self._linear(x, self._w1p, self._b1p, out_dim=F)
        return self._linear(h, self._w2p, self._b2p, out_dim=self.head_dim)

    def forward_feat(self, x):
        return self._linear(x, self._w1p, self._b1p, out_dim=self.ftdim)

    # TODO(synk): step()/step_val()/change_lr() (BCELoss + SGD-momentum
    # optimizer state) are training utilities, not forward-pass ops; not
    # implemented as kernels.


if __name__ == "__main__":
    key = jax.random.PRNGKey(0)
    kx, kx2, kp = jax.random.split(key, 3)

    batch, in_size, ftdim, head_dim = 8, 32, 64, 16
    x = jax.random.normal(kx, (batch, in_size), jnp.float32)

    # f32 model (matches the PyTorch module's numerics)
    net = NeuralNetPallas(in_size, ftdim, head_dim=head_dim, key=kp)
    out = net.forward(x)          # fc != None path (fused Linear -> head Linear)
    feat = net.forward_feat(x)    # forward_feat path
    jax.block_until_ready((out, feat))

    ref_feat = x @ net.w1 + net.b1
    ref_out = ref_feat @ net.w2 + net.b2
    assert out.shape == (batch, head_dim)
    assert feat.shape == (batch, ftdim)
    assert jnp.allclose(feat, ref_feat, atol=2e-5, rtol=2e-5)
    assert jnp.allclose(out, ref_out, atol=2e-5, rtol=2e-5)

    # fc == None branch of forward()
    net_nohead = NeuralNetPallas(in_size, ftdim, head_dim=None, key=kp)
    feat_nh = net_nohead.forward(x)
    assert jnp.allclose(feat_nh, x @ net_nohead.w1 + net_nohead.b1,
                        atol=2e-5, rtol=2e-5)

    # Ragged batch (no host-side padding of x any more)
    x_rag = jax.random.normal(kx2, (20, in_size), jnp.float32)
    feat_rag = net.forward_feat(x_rag)
    assert feat_rag.shape == (20, ftdim)
    assert jnp.allclose(feat_rag, x_rag @ net.w1 + net.b1, atol=2e-5, rtol=2e-5)

    # Column-tiled single-Linear path (1 batch step, 2 weight-column steps)
    net_wide = NeuralNetPallas(in_size, 256, head_dim=None, key=kp)
    feat_wide = net_wide.forward_feat(x)
    assert feat_wide.shape == (batch, 256)
    assert jnp.allclose(feat_wide, x @ net_wide.w1 + net_wide.b1,
                        atol=2e-5, rtol=2e-5)

    # bf16 fast path (bf16 MXU operands, f32 accumulation) - mode-aware tolerance
    net_bf16 = NeuralNetPallas(in_size, ftdim, head_dim=head_dim, key=kp,
                               compute_dtype=jnp.bfloat16)
    out_bf16 = net_bf16.forward(x)
    ref_bf16 = (x @ net_bf16.w1 + net_bf16.b1) @ net_bf16.w2 + net_bf16.b2
    assert out_bf16.shape == (batch, head_dim)
    assert jnp.allclose(out_bf16, ref_bf16, atol=5e-2, rtol=5e-2)

    jax.block_until_ready((feat_nh, feat_rag, feat_wide, out_bf16))
    print("KERNEL_OK")
</pallas_src>

<mosaic_0001>
module attributes {stable_mosaic.version = 11 : i64} {
  func.func @_probe_kernel(%arg0: i32, %arg1: memref<8x128xf32, #tpu.memory_space<vmem>>, %arg2: memref<8x128xf32, #tpu.memory_space<vmem>>) attributes {dimension_semantics = [#tpu.dimension_semantics<arbitrary>], iteration_bounds = array<i64: 1>, scalar_prefetch = 0 : i64, scratch_operands = 0 : i64, tpu.core_type = #tpu.core_type<tc>, window_params = [{pipeline_mode = #tpu.pipeline_mode<synchronous>, transform_indices = @transform_0, window_bounds = array<i64: 8, 128>}, {pipeline_mode = #tpu.pipeline_mode<synchronous>, transform_indices = @transform_1, window_bounds = array<i64: 8, 128>}]} {
    %c0 = arith.constant 0 : index
    %c0_0 = arith.constant 0 : index
    %0 = vector.load %arg1[%c0, %c0_0] : memref<8x128xf32, #tpu.memory_space<vmem>>, vector<8x128xf32>
    %cst = arith.constant 1.000000e+00 : f32
    %1 = vector.broadcast %cst : f32 to vector<8x128xf32>
    %2 = arith.addf %0, %1 : vector<8x128xf32>
    %c0_1 = arith.constant 0 : index
    %c0_2 = arith.constant 0 : index
    %3 = vector.load %arg2[%c0_1, %c0_2] : memref<8x128xf32, #tpu.memory_space<vmem>>, vector<8x128xf32>
    tpu.vector_store %arg2[%c0_1, %c0_2], %2 {strides = array<i32>} : memref<8x128xf32, #tpu.memory_space<vmem>>, vector<8x128xf32>,
    return
  }
  func.func @transform_0(%arg0: i32) -> (i32, i32) {
    %c0_i32 = arith.constant 0 : i32
    %c0_i32_0 = arith.constant 0 : i32
    %c0_i32_1 = arith.constant 0 : i32
    return %c0_i32, %c0_i32_0 : i32, i32
  }
  func.func @transform_1(%arg0: i32) -> (i32, i32) {
    %c0_i32 = arith.constant 0 : i32
    %c0_i32_0 = arith.constant 0 : i32
    %c0_i32_1 = arith.constant 0 : i32
    return %c0_i32, %c0_i32_0 : i32, i32
  }
}

module attributes {stable_mosaic.version = 11 : i64} {
  func.func @_mlp_kernel(%arg0: i32, %arg1: memref<8x32xf32, #tpu.memory_space<vmem>>, %arg2: memref<32x128xf32, #tpu.memory_space<vmem>>, %arg3: memref<1x128xf32, #tpu.memory_space<vmem>>, %arg4: memref<128x128xf32, #tpu.memory_space<vmem>>, %arg5: memref<1x128xf32, #tpu.memory_space<vmem>>, %arg6: memref<8x128xf32, #tpu.memory_space<vmem>>) attributes {dimension_semantics = [#tpu.dimension_semantics<parallel>], iteration_bounds = array<i64: 1>, scalar_prefetch = 0 : i64, scratch_operands = 0 : i64, tpu.core_type = #tpu.core_type<tc>, window_params = [{transform_indices = @transform_0, window_bounds = array<i64: 8, 32>}, {pipeline_mode = #tpu.pipeline_mode<synchronous>, transform_indices = @transform_1, window_bounds = array<i64: 32, 128>}, {pipeline_mode = #tpu.pipeline_mode<synchronous>, transform_indices = @transform_2, window_bounds = array<i64: 1, 128>}, {pipeline_mode = #tpu.pipeline_mode<synchronous>, transform_indices = @transform_3, window_bounds = array<i64: 128, 128>}, {pipeline_mode = #tpu.pipeline_mode<synchronous>, transform_indices = @transform_4, window_bounds = array<i64: 1, 128>}, {transform_indices = @transform_5, window_bounds = array<i64: 8, 128>}]} {
    %c0 = arith.constant 0 : index
    %c0_0 = arith.constant 0 : index
    %0 = vector.load %arg1[%c0, %c0_0] : memref<8x32xf32, #tpu.memory_space<vmem>>, vector<8x32xf32>
    %c0_1 = arith.constant 0 : index
    %c0_2 = arith.constant 0 : index
    %1 = vector.load %arg2[%c0_1, %c0_2] : memref<32x128xf32, #tpu.memory_space<vmem>>, vector<32x128xf32>
    %cst = arith.constant dense<0.000000e+00> : vector<8x128xf32>
    %2 = tpu.matmul %0, %1, %cst {dimension_numbers = #tpu.dot_dimension_numbers<[1], [0], [0], [1], [0, 0, 1, 1], [], []>} : vector<8x32xf32>, vector<32x128xf32>, vector<8x128xf32> -> vector<8x128xf32>
    %c0_3 = arith.constant 0 : index
    %c0_4 = arith.constant 0 : index
    %3 = vector.load %arg3[%c0_3, %c0_4] : memref<1x128xf32, #tpu.memory_space<vmem>>, vector<1x128xf32>
    %4 = vector.broadcast %3 : vector<1x128xf32> to vector<8x128xf32>
    %5 = arith.addf %2, %4 : vector<8x128xf32>
    %c0_5 = arith.constant 0 : index
    %c0_6 = arith.constant 0 : index
    %6 = vector.load %arg4[%c0_5, %c0_6] : memref<128x128xf32, #tpu.memory_space<vmem>>, vector<128x128xf32>
    %cst_7 = arith.constant dense<0.000000e+00> : vector<8x128xf32>
    %7 = tpu.matmul %5, %6, %cst_7 {dimension_numbers = #tpu.dot_dimension_numbers<[1], [0], [0], [1], [0, 0, 1, 1], [], []>} : vector<8x128xf32>, vector<128x128xf32>, vector<8x128xf32> -> vector<8x128xf32>
    %c0_8 = arith.constant 0 : index
    %c0_9 = arith.constant 0 : index
    %8 = vector.load %arg5[%c0_8, %c0_9] : memref<1x128xf32, #tpu.memory_space<vmem>>, vector<1x128xf32>
    %9 = vector.broadcast %8 : vector<1x128xf32> to vector<8x128xf32>
    %10 = arith.addf %7, %9 : vector<8x128xf32>
    %c0_10 = arith.constant 0 : index
    %c0_11 = arith.constant 0 : index
    %11 = vector.load %arg6[%c0_10, %c0_11] : memref<8x128xf32, #tpu.memory_space<vmem>>, vector<8x128xf32>
    tpu.vector_store %arg6[%c0_10, %c0_11], %10 {strides = array<i32>} : memref<8x128xf32, #tpu.memory_space<vmem>>, vector<8x128xf32>,
    return
  }
  func.func @transform_0(%arg0: i32) -> (i32, i32) {
    %c0_i32 = arith.constant 0 : i32
    %c0_i32_0 = arith.constant 0 : i32
    return %arg0, %c0_i32 : i32, i32
  }
  func.func @transform_1(%arg0: i32) -> (i32, i32) {
    %c0_i32 = arith.constant 0 : i32
    %c0_i32_0 = arith.constant 0 : i32
    %c0_i32_1 = arith.constant 0 : i32
    return %c0_i32, %c0_i32_0 : i32, i32
  }
  func.func @transform_2(%arg0: i32) -> (i32, i32) {
    %c0_i32 = arith.constant 0 : i32
    %c0_i32_0 = arith.constant 0 : i32
    %c0_i32_1 = arith.constant 0 : i32
    return %c0_i32, %c0_i32_0 : i32, i32
  }
  func.func @transform_3(%arg0: i32) -> (i32, i32) {
    %c0_i32 = arith.constant 0 : i32
    %c0_i32_0 = arith.constant 0 : i32
    %c0_i32_1 = arith.constant 0 : i32
    return %c0_i32, %c0_i32_0 : i32, i32
  }
  func.func @transform_4(%arg0: i32) -> (i32, i32) {
    %c0_i32 = arith.constant 0 : i32
    %c0_i32_0 = arith.constant 0 : i32
    %c0_i32_1 = arith.constant 0 : i32
    return %c0_i32, %c0_i32_0 : i32, i32
  }
  func.func @transform_5(%arg0: i32) -> (i32, i32) {
    %c0_i32 = arith.constant 0 : i32
    %c0_i32_0 = arith.constant 0 : i32
    return %arg0, %c0_i32 : i32, i32
  }
}

</mosaic_0001>

<bundles_post_ra>
// kernel: tpu_custom_call.1
= control target key start
LH: loop header
LB: loop body
LE: loop exit
PB: predicated region body
PF: predicated region fallthrough
CT: control target
= control target key end

     0   :  { %6 = vsyncpa [#allocation3], 0  ;;  %s125_s0 = inlined_call_operand.hbm [shape: f32[8,128], index: 0, kind: input, shape index: {}]   ;;  %s126_s1 = inlined_call_operand.hbm [shape: f32[8,128], index: 1, kind: output, shape index: {}]  }
   0x1   :  { %7 = vsyncpa [#allocation4], 0  ;;  %s89_s6 = smov [#allocation2]   ;;  %s41_s10 = scalar_lea.hbm %s125_s0, 128 }
   0x2   :  { %s14_s7 = sshll.u32 %s89_s6, 4  ;;  %p42_p0 = scmp.ne.s32.totalorder %s125_s0, %s41_s10  ;;  %s15_s7 = int_to_ptr.vmem [resolvable:$true] %s14_s7 }
   0x3   :  { %p45_p1 = scmp.lt.u32.totalorder %s41_s10, %s125_s0 }
   0x5   :  { %p47_p2 = pnand %p45_p1, %p42_p0 }
   0x7   :  { %50 = shalt.err (!%p47_p2)
}
   0x8   :  { %s51_s15 = scalar_lea.vmem %s15_s7, 128  ;;  %p56_p4 = scmp.lt.s32.totalorder %s15_s7, %s15_s7 }
   0x9   :  { %p52_p3 = scmp.ne.s32.totalorder %s15_s7, %s51_s15  ;;  %p57_p5 = scmp.lt.s32.totalorder %s51_s15, %s51_s15 }
   0xb   :  { %p58_p6 = por %p57_p5, %p56_p4 }
   0xd   :  { %p59_p7 = pnand %p58_p6, %p52_p3 }
   0xf   :  { %62 = shalt.err (!%p59_p7)
}
  0x10   :  { %17 = dma.hbm_to_vmem [thread:$0]  %s125_s0, 128, %s15_s7, [#allocation3]  }
  0x11   :  { %85 = dma.done.wait [#allocation3], 128  }
  0x12   :  { %86 = vsyncadd [#allocation3], 4294967168  ;;  %s90_s18 = smov [#allocation5]   ;;  %v21_v0 = vld [vmem:[#allocation2] sm:$0xff] }
  0x13   :  { %s30_s19 = sshll.u32 %s90_s18, 4  ;;  %v22_v1 = vadd.f32 1.0, %v21_v0  ;;  %s31_s19 = int_to_ptr.vmem [resolvable:$true] %s30_s19 }
  0x14   :  { %s63_s20 = scalar_lea.vmem %s31_s19, 128  ;;  %p68_p9 = scmp.lt.s32.totalorder %s31_s19, %s31_s19 }
  0x15   :  { %23 = vst [vmem:[#allocation5] sm:$0xff] %v22_v1  ;;  %p64_p8 = scmp.ne.s32.totalorder %s31_s19, %s63_s20  ;;  %p69_p10 = scmp.lt.s32.totalorder %s63_s20, %s63_s20 }
  0x17   :  { %p70_p11 = por %p69_p10, %p68_p9 }
  0x19   :  { %p71_p12 = pnand %p70_p11, %p64_p8 }
  0x1b   :  { %74 = shalt.err (!%p71_p12)
}
  0x1c   :  { %s75_s23 = scalar_lea.hbm %s126_s1, 128 }
  0x1d   :  { %p76_p13 = scmp.ne.s32.totalorder %s126_s1, %s75_s23  ;;  %p79_p0 = scmp.lt.u32.totalorder %s75_s23, %s126_s1 }
  0x1f   :  { %p81_p1 = pnand %p79_p0, %p76_p13 }
  0x21   :  { %84 = shalt.err (!%p81_p1)
}
  0x22   :  { %33 = dma.vmem_to_hbm [thread:$0]  %s31_s19, 128, %s126_s1, [#allocation4]  }
  0x23   :  { %87 = dma.done.wait [#allocation4], 128  }
  0x24   :  { %88 = vsyncadd [#allocation4], 4294967168 }
  0x25   :  { %37 = vsyncpa [#allocation3], 1 }
  0x26   :  { %38 = vsyncpa [#allocation4], 1 }

// kernel: _mlp_forward.1
= control target key start
LH: loop header
LB: loop body
LE: loop exit
PB: predicated region body
PF: predicated region fallthrough
CT: control target
= control target key end

     0   :  { %10 = vsyncpa [#allocation3], 0  ;;  %s559_s0 = inlined_call_operand.hbm [shape: f32[8,32], index: 0, kind: input, shape index: {}]   ;;  %s560_s1 = inlined_call_operand.hbm [shape: f32[32,128], index: 1, kind: input, shape index: {}]   ;;  %s561_s2 = inlined_call_operand.vmem [shape: f32[1,128], index: 2, kind: input, shape index: {}]   ;;  %s562_s3 = inlined_call_operand.hbm [shape: f32[128,128], index: 3, kind: input, shape index: {}]   ;;  %s563_s4 = inlined_call_operand.vmem [shape: f32[1,128], index: 4, kind: input, shape index: {}]   ;;  %s564_s5 = inlined_call_operand.hbm [shape: f32[8,128], index: 5, kind: output, shape index: {}]  }
   0x1   :  { %11 = vsyncpa [#allocation6], 0 }
   0x2   :  { %12 = vsyncpa [#allocation4], 0  ;;  %s460_s18 = smov [#allocation5]   ;;  %s366_s22 = scalar_lea.hbm %s560_s1, 512 }
   0x3   :  { %s28_s19 = sshll.u32 %s460_s18, 4  ;;  %p367_p0 = scmp.ne.s32.totalorder %s560_s1, %s366_s22  ;;  %s29_s19 = int_to_ptr.vmem [resolvable:$true] %s28_s19 }
   0x4   :  { %p370_p1 = scmp.lt.u32.totalorder %s366_s22, %s560_s1 }
   0x6   :  { %p372_p2 = pnand %p370_p1, %p367_p0 }
   0x8   :  { %375 = shalt.err (!%p372_p2)
}
   0x9   :  { %s376_s27 = scalar_lea.vmem %s29_s19, 512  ;;  %p381_p4 = scmp.lt.s32.totalorder %s29_s19, %s29_s19 }
   0xa   :  { %p377_p3 = scmp.ne.s32.totalorder %s29_s19, %s376_s27  ;;  %p382_p5 = scmp.lt.s32.totalorder %s376_s27, %s376_s27 }
   0xc   :  { %p383_p6 = por %p382_p5, %p381_p4 }
   0xe   :  { %p384_p7 = pnand %p383_p6, %p377_p3 }
  0x10   :  { %387 = shalt.err (!%p384_p7)
}
  0x11   :  { %s461_s28 = smov 128   ;;  %s462_s29 = smov 8  }
  0x12   :  { %34 = dma.hbm_to_vmem [thread:$0]  %s560_s1, 512, %s29_s19, [#allocation6], %s461_s28, %s461_s28, %s462_s29  }
  0x13   :  { %s463_s7 = smov [#allocation2]   ;;  %s464_s9 = smov [#allocation7]  }
  0x14   :  { %s19_s8 = sshll.u32 %s463_s7, 4  ;;  %s42_s10 = sshll.u32 %s464_s9, 4  ;;  %s20_s8 = int_to_ptr.vmem [resolvable:$true] %s19_s8  ;;  %s43_s10 = int_to_ptr.vmem [resolvable:$true] %s42_s10 }
  0x15   :  { %s388_s13 = scalar_lea.hbm %s559_s0, 128 }
  0x16   :  { %p389_p8 = scmp.ne.s32.totalorder %s559_s0, %s388_s13  ;;  %p392_p9 = scmp.lt.u32.totalorder %s388_s13, %s559_s0 }
  0x18   :  { %p394_p10 = pnand %p392_p9, %p389_p8 }
  0x1a   :  { %397 = shalt.err (!%p394_p10)
}
  0x1b   :  { %s398_s1 = scalar_lea.vmem %s20_s8, 128  ;;  %p403_p12 = scmp.lt.s32.totalorder %s20_s8, %s20_s8 }
  0x1c   :  { %p399_p11 = scmp.ne.s32.totalorder %s20_s8, %s398_s1  ;;  %p404_p13 = scmp.lt.s32.totalorder %s398_s1, %s398_s1 }
  0x1e   :  { %p405_p0 = por %p404_p13, %p403_p12 }
  0x20   :  { %p406_p1 = pnand %p405_p0, %p399_p11 }
  0x22   :  { %409 = shalt.err (!%p406_p1)
}
  0x23   :  { %22 = dma.hbm_to_vmem [thread:$0]  %s559_s0, 128, %s20_s8, [#allocation3]  }
  0x24   :  { %s410_s22 = scalar_lea.hbm %s562_s3, 2048 }
  0x25   :  { %p411_p2 = scmp.ne.s32.totalorder %s562_s3, %s410_s22  ;;  %p414_p3 = scmp.lt.u32.totalorder %s410_s22, %s562_s3 }
  0x27   :  { %p416_p4 = pnand %p414_p3, %p411_p2 }
  0x29   :  { %419 = shalt.err (!%p416_p4)
}
  0x2a   :  { %s420_s27 = scalar_lea.vmem %s43_s10, 2048  ;;  %p425_p6 = scmp.lt.s32.totalorder %s43_s10, %s43_s10 }
  0x2b   :  { %p421_p5 = scmp.ne.s32.totalorder %s43_s10, %s420_s27  ;;  %p426_p7 = scmp.lt.s32.totalorder %s420_s27, %s420_s27 }
  0x2d   :  { %p427_p8 = por %p426_p7, %p425_p6 }
  0x2f   :  { %p428_p9 = pnand %p427_p8, %p421_p5 }
  0x31   :  { %431 = shalt.err (!%p428_p9)
}
  0x32   :  { %48 = dma.hbm_to_vmem [thread:$0]  %s562_s3, 2048, %s43_s10, [#allocation6], %s461_s28, %s461_s28, %s462_s29  }
  0x33   :  { %454 = dma.done.wait [#allocation3], 128  }
  0x34   :  { %455 = vsyncadd [#allocation3], 4294967168 }
  0x35   :  { %456 = dma.done.wait [#allocation6], 2560  }
  0x36   :  { %457 = vsyncadd [#allocation6], 4294964736  ;;  %v465_v0 = vmov 0.0|0.0   ;;  %vm466_vm0 = vmmov 0   ;;  %v467_v1 = vmov 0.0   ;;  %v61_v2 = vld [vmem:[#allocation5] sm:$0xff] }
  0x37   :  { %327 = vmatprep.subr.bf16.mxu0 %v465_v0  ;;  %289 = vmatprep.mubr.msk.f32.mxu0 %vm466_vm0, %v467_v1  ;;  %v62_v3 = vld [vmem:[#allocation5 + $0x8] sm:$0xff]  ;;  %v63_v4 = vld [vmem:[#allocation5 + $0x10] sm:$0xff]  ;;  %v64_v6 = vld [vmem:[#allocation5 + $0x18] sm:$0xff]  ;;  %vm72_vm1 = vcmask 261120   ;;  %s468_s7 = smov [#allocation8]  }
  0x38   :  { %333 = vmatprep.subr.bf16.mxu1 %v465_v0  ;;  %324 = vmatprep.mubr.msk.f32.mxu1 %vm466_vm0, %v467_v1  ;;  %v328_v5 = vpack.c.bf16 %v62_v3, %v61_v2  ;;  %v146_v7 = vld [vmem:[#allocation7] sm:$0xff]  ;;  %v147_v8 = vld [vmem:[#allocation7 + $0x8] sm:$0xff]  ;;  %v148_v9 = vld [vmem:[#allocation7 + $0x10] sm:$0xff]  ;;  %v331_v11 = vpack.c.bf16 %v64_v6, %v63_v4  ;;  %s246_s8 = sshll.u32 %s468_s7, 4  ;;  %s247_s8 = int_to_ptr.vmem [resolvable:$true] %s246_s8 }
  0x39   :  { %v149_v10 = vld [vmem:[#allocation7 + $0x18] sm:$0xff]  ;;  %v334_v12 = vpack.c.bf16 %v147_v8, %v146_v7  ;;  %v150_v14 = vld [vmem:[#allocation7 + $0x20] sm:$0xff]  ;;  %v151_v15 = vld [vmem:[#allocation7 + $0x28] sm:$0xff]  ;;  %s432_s9 = scalar_lea.vmem %s247_s8, 128  ;;  %p437_p11 = scmp.lt.s32.totalorder %s247_s8, %s247_s8 }
  0x3a   :  { %329 = vmatpush3.bf16.msra.mxu0 %v328_v5  ;;  %v337_v13 = vpack.c.bf16 %v149_v10, %v148_v9  ;;  %v60_v16 = vld [vmem:[#allocation2] sm:$0xff]  ;;  %v340_v17 = vpack.c.bf16 %v151_v15, %v150_v14  ;;  %v152_v18 = vld [vmem:[#allocation7 + $0x30] sm:$0xff]  ;;  %v154_v21 = vld [vmem:[#allocation7 + $0x40] sm:$0xff]  ;;  %p433_p10 = scmp.ne.s32.totalorder %s247_s8, %s432_s9  ;;  %p438_p12 = scmp.lt.s32.totalorder %s432_s9, %s432_s9 }
  0x3b   :  { %330 = vmatprep.subr.bf16.mxu0 %v465_v0  ;;  %335 = vmatpush3.bf16.msra.mxu1 %v334_v12  ;;  %v153_v19 = vld [vmem:[#allocation7 + $0x38] sm:$0xff]  ;;  %v155_v22 = vld [vmem:[#allocation7 + $0x48] sm:$0xff]  ;;  %v156_v24 = vld [vmem:[#allocation7 + $0x50] sm:$0xff] }
  0x3c   :  { %336 = vmatprep.subr.bf16.mxu1 %v465_v0  ;;  %v343_v20 = vpack.c.bf16 %v153_v19, %v152_v18  ;;  %v346_v23 = vpack.c.bf16 %v155_v22, %v154_v21  ;;  %v157_v25 = vld [vmem:[#allocation7 + $0x58] sm:$0xff]  ;;  %v158_v27 = vld [vmem:[#allocation7 + $0x60] sm:$0xff]  ;;  %v159_v28 = vld [vmem:[#allocation7 + $0x68] sm:$0xff]  ;;  %p439_p13 = por %p438_p12, %p437_p11 }
  0x3d   :  { %v349_v26 = vpack.c.bf16 %v157_v25, %v156_v24  ;;  %v352_v29 = vpack.c.bf16 %v159_v28, %v158_v27  ;;  %v160_v30 = vld [vmem:[#allocation7 + $0x70] sm:$0xff]  ;;  %v161_v31 = vld [vmem:[#allocation7 + $0x78] sm:$0xff] }
  0x3e   :  { %332 = vmatpush3.bf16.msra.mxu0 %v331_v11  ;;  %v355_v32 = vpack.c.bf16 %v161_v31, %v160_v30  ;;  %v256_v33 = vld [vmem:[%s561_s2] ss:$0 sm:$0xff]  ;;  %p440_p0 = pnand %p439_p13, %p433_p10 }
  0x3f   :  { %338 = vmatpush3.bf16.msra.mxu1 %v337_v13  ;;  %v258_v37 = vld [vmem:[%s563_s4] ss:$0 sm:$0xff] }
  0x40   :  { %339 = vmatprep.subr.bf16.mxu1 %v465_v0 }
  0x41   :  { %290 = vmatmul.mubr.msk.f32.vlgmr.msra.gmra.mrb[0].mxu0 %vm72_vm1, %v60_v16 }
  0x43   :  { %341 = vmatpush3.bf16.msra.mxu1 %v340_v17 }
  0x44   :  { %342 = vmatprep.subr.bf16.mxu1 %v465_v0 }
  0x47   :  { %344 = vmatpush3.bf16.msra.mxu1 %v343_v20 }
  0x48   :  { %345 = vmatprep.subr.bf16.mxu1 %v465_v0 }
  0x4b   :  { %347 = vmatpush3.bf16.msra.mxu1 %v346_v23 }
  0x4c   :  { %348 = vmatprep.subr.bf16.mxu1 %v465_v0 }
  0x4f   :  { %350 = vmatpush3.bf16.msra.mxu1 %v349_v26 }
  0x50   :  { %351 = vmatprep.subr.bf16.mxu1 %v465_v0 }
  0x53   :  { %353 = vmatpush3.bf16.msra.mxu1 %v352_v29 }
  0x54   :  { %354 = vmatprep.subr.bf16.mxu1 %v465_v0 }
  0x57   :  { %356 = vmatpush3.bf16.msra.mxu1 %v355_v32 }
 0x114   :  { %v142_v34 = vpop.f32.mrb[0].mxu0 }
 0x115   :  { %v143_v35 = vadd.f32 %v256_v33, %v142_v34  ;;  %v291_v36 = vpop.f32.mrb[1].mxu0 }
 0x117   :  { %325 = vmatmul.mubr.f32.vlgmr.msra.gmra.mrb[0].mxu1 %v143_v35 }
 0x1ea   :  { %v235_v38 = vpop.f32.mrb[0].mxu1 }
 0x1eb   :  { %v236_v39 = vadd.f32 %v258_v37, %v235_v38  ;;  %v326_v40 = vpop.f32.mrb[1].mxu1 }
 0x1ed   :  { %239 = vst [vmem:[#allocation8] sm:$0xff] %v236_v39 }
 0x1ee   :  { %443 = shalt.err (!%p440_p0)
}
 0x1ef   :  { %s444_s11 = scalar_lea.hbm %s564_s5, 128 }
 0x1f0   :  { %p445_p1 = scmp.ne.s32.totalorder %s564_s5, %s444_s11  ;;  %p448_p2 = scmp.lt.u32.totalorder %s444_s11, %s564_s5 }
 0x1f2   :  { %p450_p3 = pnand %p448_p2, %p445_p1 }
 0x1f4   :  { %453 = shalt.err (!%p450_p3)
}
 0x1f5   :  { %249 = dma.vmem_to_hbm [thread:$0]  %s247_s8, 128, %s564_s5, [#allocation4]  }
 0x1f6   :  { %458 = dma.done.wait [#allocation4], 128  }
 0x1f7   :  { %459 = vsyncadd [#allocation4], 4294967168 }
 0x1f8   :  { %253 = vsyncpa [#allocation3], 1 }
 0x1f9   :  { %254 = vsyncpa [#allocation6], 1 }
 0x1fa   :  { %255 = vsyncpa [#allocation4], 1 }

</bundles_post_ra>
